<compile_context>
chip_gen: v7x
topology: tpu7x:2x2x1
jax: 0.10.0
libtpu: 0.0.40
codegen_flags: <defaults>
</compile_context>

<pallas_src>
import jax
import jax.numpy as jnp
from jax.experimental import pallas as pl
from jax.experimental.pallas import tpu as pltpu


def _round_down(v: int, m: int) -> int:
    return (v // m) * m


def _round_up(v: int, m: int) -> int:
    return ((v + m - 1) // m) * m


def _default_block_bytes() -> int:
    """Per-generation block-size target (bytes per operand block)."""
    kind = ""
    try:
        kind = jax.devices()[0].device_kind.lower()
    except Exception:
        pass
    if ("v6" in kind) or ("v7" in kind) or ("7x" in kind):
        # v6e (1.4 TB/s) / v7x (3.2 TB/s): bigger blocks amortize the ~0.35 us
        # per-grid-step overhead.  6 x 4 MiB pipelined footprint = 24 MiB.
        return 4 * 1024 * 1024
    # v5e / unknown: 16 MiB default scoped VMEM -> stay conservative.
    return 1536 * 1024


def _add_pos_kernel(x_ref, pos_ref, o_ref):
    # Blocks either match exactly ((TS, D) + (TS, D)) or broadcast over the
    # batch rows ((B, TN) + (1, TN)).  Pure VPU add; kernel stays DMA-bound.
    o_ref[...] = (x_ref[...] + pos_ref[...]).astype(o_ref.dtype)


def absolute_positional_embedding(
    x: jax.Array,
    pos_table: jax.Array,
    *,
    target_block_bytes: int | None = None,
    donate_x: bool = False,
) -> jax.Array:
    """x: (B, S, D); pos_table: (max_seq_len, D). Returns x + pos_table[:S]."""
    B, S, D = x.shape
    max_seq_len, D2 = pos_table.shape
    assert D == D2 and S <= max_seq_len

    # Store/read the table in the activation dtype (halves table traffic for
    # bf16 activations and avoids per-block promotes inside the kernel).
    if pos_table.dtype != x.dtype:
        pos_table = pos_table.astype(x.dtype)

    if target_block_bytes is None:
        target_block_bytes = _default_block_bytes()

    itemsize = jnp.dtype(x.dtype).itemsize
    spack = max(8, 32 // itemsize)   # sublane packing: 8 (f32), 16 (bf16), 32 (i8)
    # Raise the scoped-VMEM limit explicitly when using the larger blocks.
    vmem_limit = 40 * 1024 * 1024 if target_block_bytes >= 4 * 1024 * 1024 else None
    io_alias = {0: 0} if donate_x else {}

    if D % 128 == 0:
        # ---- Natively lane-dense path: tile the sequence axis. ----
        # TS is always a multiple of spack; ragged S handled by edge masking
        # (no full-extent fallback, no wrapper-side pos_table[:S] copy).
        ts = min(_round_up(S, spack),
                 max(spack, _round_down(target_block_bytes // (D * itemsize), spack)))
        num_s = pl.cdiv(S, ts)
        return pl.pallas_call(
            _add_pos_kernel,
            out_shape=jax.ShapeDtypeStruct((B, S, D), x.dtype),
            grid_spec=pltpu.PrefetchScalarGridSpec(
                num_scalar_prefetch=0,
                grid=(num_s, B),                   # batch innermost -> pos block reused
                in_specs=[
                    pl.BlockSpec((pl.Squeezed(), ts, D), lambda s, b: (b, s, 0)),
                    pl.BlockSpec((ts, D), lambda s, b: (s, 0)),
                ],
                out_specs=pl.BlockSpec((pl.Squeezed(), ts, D), lambda s, b: (b, s, 0)),
            ),
            compiler_params=pltpu.CompilerParams(
                dimension_semantics=("parallel", "parallel"),
                vmem_limit_bytes=vmem_limit),
            input_output_aliases=io_alias,
        )(x, pos_table)

    # ---- D not a multiple of 128: flatten so stores are lane-dense. ----
    F = S * D
    x2 = x.reshape(B, F)                           # free reshape (contiguous)
    if F >= 128:
        # Block width from the sublane-PADDED row count so the real VMEM
        # footprint (B padded to 8/16/32 sublanes) matches the budget.
        bp = _round_up(B, spack)
        tn = min(_round_up(F, 128),
                 max(128, _round_down(target_block_bytes // (bp * itemsize), 128)))
        # First F elements of the flattened table == pos_table[:S] flattened.
        pos_op = pos_table.reshape(1, max_seq_len * D)   # free reshape, no copy
    else:
        tn = F                                     # tiny case: full-extent block
        pos_op = pos_table[:S].reshape(1, F)
    num_n = pl.cdiv(F, tn)
    out2 = pl.pallas_call(
        _add_pos_kernel,
        out_shape=jax.ShapeDtypeStruct((B, F), x.dtype),
        grid_spec=pltpu.PrefetchScalarGridSpec(
            num_scalar_prefetch=0,
            grid=(num_n,),
            in_specs=[
                pl.BlockSpec((B, tn), lambda n: (0, n)),
                pl.BlockSpec((1, tn), lambda n: (0, n)),
            ],
            out_specs=pl.BlockSpec((B, tn), lambda n: (0, n)),
        ),
        compiler_params=pltpu.CompilerParams(
            dimension_semantics=("parallel",),
            vmem_limit_bytes=vmem_limit),
        input_output_aliases=io_alias,
    )(x2, pos_op)
    return out2.reshape(B, S, D)


class AbsolutePositionalEmbeddingPallas:
    """Mirrors the PyTorch module: holds a (max_seq_len, embed_dim) table."""

    def __init__(self, max_seq_len: int, embed_dim: int, key: jax.Array,
                 dtype=jnp.float32):
        self.max_seq_len = max_seq_len
        self.embed_dim = embed_dim
        # nn.Embedding default init ~ N(0, 1); deterministic synthetic init here.
        self.position_embeddings = jax.random.normal(
            key, (max_seq_len, embed_dim), dtype=jnp.float32).astype(dtype)

    def __call__(self, x: jax.Array, **kw) -> jax.Array:
        return absolute_positional_embedding(x, self.position_embeddings, **kw)


if __name__ == "__main__":
    key = jax.random.PRNGKey(0)
    keys = jax.random.split(key, 8)

    def ref_fn(x, table):
        return x + table[: x.shape[1]].astype(x.dtype)[None, :, :]

    # Case 1: module demo shapes (B=2, S=8, D=32) -> flattened lane-dense path.
    mod1 = AbsolutePositionalEmbeddingPallas(16, 32, keys[0])
    x1 = jax.random.normal(keys[1], (2, 8, 32), dtype=jnp.float32)
    out1 = jax.block_until_ready(mod1(x1))
    assert out1.shape == x1.shape
    assert jnp.allclose(out1, ref_fn(x1, mod1.position_embeddings), atol=1e-6), \
        "mismatch (flattened path)"

    # Case 2: lane-dense D=128, ragged S=21 with forced small tiles -> tiled-seq
    # path with a masked edge block (full-extent-S fallback removed).
    mod2 = AbsolutePositionalEmbeddingPallas(40, 128, keys[2])
    x2 = jax.random.normal(keys[3], (2, 21, 128), dtype=jnp.float32)
    out2 = jax.block_until_ready(mod2(x2, target_block_bytes=16 * 128 * 4))
    assert jnp.allclose(out2, ref_fn(x2, mod2.position_embeddings), atol=1e-6), \
        "mismatch (tiled-seq path)"

    # Case 3: flattened path with forced tiling + ragged edge (F=576, TN=128);
    # block width sized from the sublane-padded row count (B=2 -> 8 rows).
    mod3 = AbsolutePositionalEmbeddingPallas(10, 96, keys[4])
    x3 = jax.random.normal(keys[5], (2, 6, 96), dtype=jnp.float32)
    out3 = jax.block_until_ready(mod3(x3, target_block_bytes=4096))
    assert jnp.allclose(out3, ref_fn(x3, mod3.position_embeddings), atol=1e-6), \
        "mismatch (flattened tiled path)"

    # Case 4: bf16 activations + f32 table (cast to x.dtype wrapper-side),
    # D=256 lane-dense path with S < sublane pack (edge-masked single block).
    mod4 = AbsolutePositionalEmbeddingPallas(32, 256, keys[6])
    x4 = jax.random.normal(keys[7], (2, 8, 256), dtype=jnp.bfloat16)
    out4 = jax.block_until_ready(mod4(x4))
    assert out4.dtype == jnp.bfloat16
    assert jnp.allclose(out4.astype(jnp.float32),
                        ref_fn(x4, mod4.position_embeddings).astype(jnp.float32),
                        atol=1e-2), "mismatch (bf16 path)"

    print("KERNEL_OK")
</pallas_src>

<mosaic_0001>
module attributes {stable_mosaic.version = 11 : i64} {
  func.func @_add_pos_kernel(%arg0: i32, %arg1: memref<2x256xf32, #tpu.memory_space<vmem>>, %arg2: memref<1x256xf32, #tpu.memory_space<vmem>>, %arg3: memref<2x256xf32, #tpu.memory_space<vmem>>) attributes {dimension_semantics = [#tpu.dimension_semantics<parallel>], iteration_bounds = array<i64: 1>, scalar_prefetch = 0 : i64, scratch_operands = 0 : i64, tpu.core_type = #tpu.core_type<tc>, window_params = [{transform_indices = @transform_0, window_bounds = array<i64: 2, 256>}, {transform_indices = @transform_1, window_bounds = array<i64: 1, 256>}, {transform_indices = @transform_2, window_bounds = array<i64: 2, 256>}]} {
    %c0 = arith.constant 0 : index
    %c0_0 = arith.constant 0 : index
    %0 = vector.load %arg1[%c0, %c0_0] : memref<2x256xf32, #tpu.memory_space<vmem>>, vector<2x256xf32>
    %c0_1 = arith.constant 0 : index
    %c0_2 = arith.constant 0 : index
    %1 = vector.load %arg2[%c0_1, %c0_2] : memref<1x256xf32, #tpu.memory_space<vmem>>, vector<1x256xf32>
    %2 = vector.broadcast %1 : vector<1x256xf32> to vector<2x256xf32>
    %3 = arith.addf %0, %2 : vector<2x256xf32>
    %c0_3 = arith.constant 0 : index
    %c0_4 = arith.constant 0 : index
    %4 = vector.load %arg3[%c0_3, %c0_4] : memref<2x256xf32, #tpu.memory_space<vmem>>, vector<2x256xf32>
    tpu.vector_store %arg3[%c0_3, %c0_4], %3 {strides = array<i32>} : memref<2x256xf32, #tpu.memory_space<vmem>>, vector<2x256xf32>,
    return
  }
  func.func @transform_0(%arg0: i32) -> (i32, i32) {
    %c0_i32 = arith.constant 0 : i32
    %c0_i32_0 = arith.constant 0 : i32
    return %c0_i32, %arg0 : i32, i32
  }
  func.func @transform_1(%arg0: i32) -> (i32, i32) {
    %c0_i32 = arith.constant 0 : i32
    %c0_i32_0 = arith.constant 0 : i32
    return %c0_i32, %arg0 : i32, i32
  }
  func.func @transform_2(%arg0: i32) -> (i32, i32) {
    %c0_i32 = arith.constant 0 : i32
    %c0_i32_0 = arith.constant 0 : i32
    return %c0_i32, %arg0 : i32, i32
  }
}

</mosaic_0001>

<bundles_post_ra>
// kernel: tpu_custom_call.1
= control target key start
LH: loop header
LB: loop body
LE: loop exit
PB: predicated region body
PF: predicated region fallthrough
CT: control target
= control target key end

     0   :  { %7 = vsyncpa [#allocation3], 0  ;;  %s215_s0 = inlined_call_operand.hbm [shape: f32[2,256], index: 0, kind: input, shape index: {}]   ;;  %s216_s1 = inlined_call_operand.hbm [shape: f32[1,512], index: 1, kind: input, shape index: {}]   ;;  %s217_s2 = inlined_call_operand.hbm [shape: f32[2,256], index: 2, kind: output, shape index: {}]  }
   0x1   :  { %8 = vsyncpa [#allocation6], 0 }
   0x2   :  { %9 = vsyncpa [#allocation4], 0  ;;  %s150_s9 = smov [#allocation2]   ;;  %s151_s11 = smov [#allocation5]  }
   0x3   :  { %s16_s10 = sshll.u32 %s150_s9, 4  ;;  %s26_s12 = sshll.u32 %s151_s11, 4  ;;  %s17_s10 = int_to_ptr.vmem [resolvable:$true] %s16_s10  ;;  %s169_s12 = int_to_ptr.vmem [resolvable:$true] %s26_s12 }
   0x4   :  { %s78_s15 = scalar_lea.hbm %s215_s0, 64 }
   0x5   :  { %p79_p0 = scmp.ne.s32.totalorder %s215_s0, %s78_s15  ;;  %p82_p1 = scmp.lt.u32.totalorder %s78_s15, %s215_s0 }
   0x7   :  { %p84_p2 = pnand %p82_p1, %p79_p0 }
   0x9   :  { %87 = shalt.err (!%p84_p2)
}
   0xa   :  { %s88_s20 = scalar_lea.vmem %s17_s10, 64  ;;  %p93_p4 = scmp.lt.s32.totalorder %s17_s10, %s17_s10 }
   0xb   :  { %p89_p3 = scmp.ne.s32.totalorder %s17_s10, %s88_s20  ;;  %p94_p5 = scmp.lt.s32.totalorder %s88_s20, %s88_s20 }
   0xd   :  { %p95_p6 = por %p94_p5, %p93_p4 }
   0xf   :  { %p96_p7 = pnand %p95_p6, %p89_p3 }
  0x11   :  { %99 = shalt.err (!%p96_p7)
}
  0x12   :  { %19 = dma.hbm_to_vmem [thread:$0]  %s215_s0, 64, %s17_s10, [#allocation3]  }
  0x13   :  { %s100_s25 = scalar_lea.hbm %s216_s1, 32  ;;  %s102_s30 = scalar_lea.hbm %s216_s1, 64 }
  0x14   :  { %p101_p8 = scmp.ne.s32.totalorder %s216_s1, %s100_s25  ;;  %p103_p9 = scmp.lt.u32.totalorder %s102_s30, %s100_s25 }
  0x15   :  { %p104_p10 = scmp.lt.u32.totalorder %s100_s25, %s216_s1 }
  0x17   :  { %p105_p11 = por %p104_p10, %p103_p9 }
  0x19   :  { %p106_p12 = pnand %p105_p11, %p101_p8 }
  0x1b   :  { %109 = shalt.err (!%p106_p12)
}
  0x1c   :  { %s110_s0 = scalar_lea.vmem %s169_s12, 32  ;;  %p115_p0 = scmp.lt.s32.totalorder %s169_s12, %s169_s12 }
  0x1d   :  { %p111_p13 = scmp.ne.s32.totalorder %s169_s12, %s110_s0  ;;  %p116_p1 = scmp.lt.s32.totalorder %s110_s0, %s110_s0 }
  0x1f   :  { %p117_p2 = por %p116_p1, %p115_p0 }
  0x21   :  { %p118_p3 = pnand %p117_p2, %p111_p13 }
  0x23   :  { %121 = shalt.err (!%p118_p3)
}
  0x24   :  { %29 = dma.hbm_to_vmem [thread:$0]  %s216_s1, 32, %s169_s12, [#allocation6]  }
  0x25   :  { %144 = dma.done.wait [#allocation3], 64  }
  0x26   :  { %145 = vsyncadd [#allocation3], 4294967232 }
  0x27   :  { %146 = dma.done.wait [#allocation6], 32  }
  0x28   :  { %147 = vsyncadd [#allocation6], 4294967264  ;;  %v39_v0 = vlaneseq  ;;  %v152_v1 = vmov 1983009808   ;;  %v37_v7 = vld [vmem:[#allocation5] sm:$0x3] }
  0x29   :  { %v49_v2 = vunpack.c.l.s4 %v152_v1  ;;  %v36_v12 = vld [vmem:[#allocation2] sm:$0xf]  ;;  %s153_s7 = smov [#allocation7]  }
  0x2a   :  { %v40_v3 = vshrl.u32 %v39_v0, 7  ;;  %s64_s8 = sshll.u32 %s153_s7, 4  ;;  %s65_s8 = int_to_ptr.vmem [resolvable:$true] %s64_s8 }
  0x2b   :  { %v50_v6 = vunpack.c.0.s8 %v49_v2  ;;  %s122_s1 = scalar_lea.vmem %s65_s8, 64  ;;  %p127_p5 = scmp.lt.s32.totalorder %s65_s8, %s65_s8 }
  0x2c   :  { %v41_v4 = vsub.s32 0, %v40_v3  ;;  %v45_v5 = vsub.s32 1, %v40_v3  ;;  %p123_p4 = scmp.ne.s32.totalorder %s65_s8, %s122_s1  ;;  %p128_p6 = scmp.lt.s32.totalorder %s122_s1, %s122_s1 }
  0x2d   :  { %v53_v10 = vsub.s32 %v50_v6, %v40_v3 }
  0x2e   :  { %v42_v8 = vrot.slane %v37_v7, %v41_v4  ;;  %v46_v9 = vrot.slane %v37_v7, %v45_v5  ;;  %p129_p7 = por %p128_p6, %p127_p5 }
  0x30   :  { %v47_v11 = vcombine.low %v42_v8, %v46_v9  ;;  %p130_p8 = pnand %p129_p7, %p123_p4 }
  0x32   :  { %v54_v13 = vrot.slane %v47_v11, %v53_v10 }
  0x34   :  { %v56_v14 = vadd.f32 %v54_v13, %v36_v12 }
  0x36   :  { %57 = vst [vmem:[#allocation7] sm:$0xf] %v56_v14 }
  0x37   :  { %133 = shalt.err (!%p130_p8)
}
  0x38   :  { %s134_s11 = scalar_lea.hbm %s217_s2, 64 }
  0x39   :  { %p135_p9 = scmp.ne.s32.totalorder %s217_s2, %s134_s11  ;;  %p138_p10 = scmp.lt.u32.totalorder %s134_s11, %s217_s2 }
  0x3b   :  { %p140_p11 = pnand %p138_p10, %p135_p9 }
  0x3d   :  { %143 = shalt.err (!%p140_p11)
}
  0x3e   :  { %67 = dma.vmem_to_hbm [thread:$0]  %s65_s8, 64, %s217_s2, [#allocation4]  }
  0x3f   :  { %148 = dma.done.wait [#allocation4], 64  }
  0x40   :  { %149 = vsyncadd [#allocation4], 4294967232 }
  0x41   :  { %71 = vsyncpa [#allocation3], 1 }
  0x42   :  { %72 = vsyncpa [#allocation6], 1 }
  0x43   :  { %73 = vsyncpa [#allocation4], 1 }

</bundles_post_ra>
